<compile_context>
chip_gen: v7x
topology: tpu7x:2x2x1
jax: 0.10.0
libtpu: 0.0.40
codegen_flags: <defaults>
</compile_context>

<pallas_src>
import math

import jax
import jax.numpy as jnp
from jax.experimental import pallas as pl
from jax.experimental.pallas import tpu as pltpu


# ---------------------------------------------------------------------------
# Tile selection
# ---------------------------------------------------------------------------

def _vmem_budget_bytes():
    """Target per-step double-buffered activation footprint (bytes)."""
    phys = None
    try:
        phys = getattr(pltpu.get_tpu_info(), "vmem_capacity_bytes", None)
    except Exception:  # query not available -> conservative default
        phys = None
    if not phys:
        return 12 << 20
    # Keep the pipeline footprint well below physical VMEM (v7x has only
    # 64 MiB per TensorCore; v5e/v6e have 128 MiB).
    return max(4 << 20, min(16 << 20, int(phys) // 4))


def _largest_divisor_leq(n, cap):
    cap = max(1, min(n, cap))
    for d in range(cap, 0, -1):
        if n % d == 0:
            return d
    return 1


def _choose_tiles(n, hw, lanes_budget):
    """Return (spatial_tile, batch_tile) for blocks of shape (TB, Cin, THW)."""
    if hw <= lanes_budget:
        # Small / medium resolution: one full-HW tile, pack batch samples per
        # grid step so each DMA stays large.
        thw = hw
        tb = _largest_divisor_leq(n, max(1, lanes_budget // max(hw, 1)))
        if (n // tb) < 2:
            # Megacore (v7x): prefer >=2 grid steps, but only when each block
            # still carries enough lanes for an efficient DMA.
            if n >= 2:
                half_tb = _largest_divisor_leq(n, max(1, tb // 2))
                if half_tb < tb and half_tb * hw >= 4096:
                    tb = half_tb
            elif hw >= 8192:
                thw = ((hw // 2 + 127) // 128) * 128  # two ~even 128-aligned tiles
        return thw, tb

    # Large resolution: one sample per step, big 128-aligned spatial tile.
    # hw > lanes_budget guarantees >= 2 spatial steps (megacore-friendly).
    thw = max(128, (lanes_budget // 128) * 128)
    return thw, 1


# ---------------------------------------------------------------------------
# Kernel
# ---------------------------------------------------------------------------

def _make_mask_kernel(tb: int):
    """Kernel over a block of TB samples: (Cout,Cin) @ (Cin,THW) + bias each."""

    def kernel(x_ref, w_ref, b_ref, o_ref):
        # x_ref: (TB, Cin, THW)   activations, spatial on lanes (native dtype)
        # w_ref: (Cout, Cin)      scaled, concatenated sem+ins weights
        # b_ref: (Cout, 1)        concatenated bias (f32)
        # o_ref: (TB, Cout, THW)  lane-dense output block
        w = w_ref[...]
        bias = b_ref[...]

        def one(i):
            acc = jnp.dot(w, x_ref[i], preferred_element_type=jnp.float32)
            o_ref[i] = (acc + bias).astype(o_ref.dtype)

        if tb <= 8:
            for i in range(tb):          # short static unroll
                one(i)
        else:
            def body(i, carry):
                one(i)
                return carry
            jax.lax.fori_loop(0, tb, body, 0, unroll=False)

    return kernel


# ---------------------------------------------------------------------------
# Wrapper (the Mask.forward equivalent)
# ---------------------------------------------------------------------------

def mask_forward(x_nchw, w_sem, b_sem, w_ins=None, b_ins=None,
                 *, tile_hw=None, tile_b=None):
    """Forward pass of Mask.

    x_nchw : (N, Cin, H, W), any float dtype (bf16 passes through natively)
    w_sem  : (Cout_sem, Cin) raw (unscaled) equalized weights; b_sem (Cout_sem,)
    w_ins  : (Cout_ins, Cin) or None when not panoptic; b_ins (Cout_ins,)
    returns: (N, Cout_total, H, W) in x's dtype
    """
    N, Cin, H, W = x_nchw.shape
    HW = H * W

    # Equalized-LR runtime scaling: gain=1, fan_in = Cin * 1 * 1.
    scale = 1.0 / math.sqrt(Cin)

    if w_ins is not None:
        w = jnp.concatenate([w_sem, w_ins], axis=0)    # (Cout_total, Cin)
        b = jnp.concatenate([b_sem, b_ins], axis=0)    # (Cout_total,)
    else:
        w, b = w_sem, b_sem
    Cout = int(w.shape[0])

    x_dtype = x_nchw.dtype
    out_dtype = x_dtype
    w_mat = (w.astype(jnp.float32) * scale).astype(x_dtype)   # tiny: (Cout, Cin)
    b_mat = b.reshape(Cout, 1).astype(jnp.float32)            # (Cout, 1)

    # NCHW -> (N, Cin, H*W): a pure reshape (no data movement), spatial last.
    x3 = x_nchw.reshape(N, Cin, HW)

    # Tile sizing from the VMEM budget:
    #   per-step double-buffered footprint ~= 2 * TB * THW * (Cin*bx + Cout*bo)
    x_bytes = jnp.dtype(x_dtype).itemsize
    o_bytes = jnp.dtype(out_dtype).itemsize
    lane_bytes = Cin * x_bytes + Cout * o_bytes
    lanes_budget = max(128, _vmem_budget_bytes() // (2 * lane_bytes))

    if tile_hw is None or tile_b is None:
        thw, tb = _choose_tiles(N, HW, lanes_budget)
    else:
        thw, tb = int(tile_hw), int(tile_b)

    n_batch = pl.cdiv(N, tb)
    n_spatial = pl.cdiv(HW, thw)

    out3 = pl.pallas_call(
        _make_mask_kernel(tb),
        out_shape=jax.ShapeDtypeStruct((N, Cout, HW), out_dtype),
        grid_spec=pltpu.PrefetchScalarGridSpec(
            num_scalar_prefetch=0,
            grid=(n_batch, n_spatial),
            in_specs=[
                pl.BlockSpec((tb, Cin, thw), lambda n, j: (n, 0, j)),
                pl.BlockSpec((Cout, Cin), lambda n, j: (0, 0)),
                pl.BlockSpec((Cout, 1), lambda n, j: (0, 0)),
            ],
            out_specs=pl.BlockSpec((tb, Cout, thw), lambda n, j: (n, 0, j)),
        ),
        compiler_params=pltpu.CompilerParams(
            dimension_semantics=("parallel", "parallel"),
            # Explicit limit: raises v5e's 16 MiB scoped default, matches the
            # v6e/v7x default, and comfortably covers the ~12-16 MiB tiles.
            vmem_limit_bytes=32 * 1024 * 1024,
        ),
    )(x3, w_mat, b_mat)

    # (N, Cout, H*W) -> NCHW, again a free reshape.
    return out3.reshape(N, Cout, H, W)


# ---------------------------------------------------------------------------
# Demo / correctness check
# ---------------------------------------------------------------------------

if __name__ == "__main__":
    # Synthetic "opt" configuration:
    #   num_semantics=8, not fill_crop_only, not merged_activation -> +1
    #   sem_label_ban has 1 entry -> -1  => out_semantics = 8
    #   panoptic=True, instance_type = ['density','center_offset','edge'],
    #   num_things=4  => out_instance = 4 + 3 + 1 = 8
    in_channels = 32
    out_sem = 8
    out_ins = 8
    N, H, W = 2, 16, 16

    key = jax.random.PRNGKey(0)
    kx, kws, kwi, kbs, kbi = jax.random.split(key, 5)

    x = jax.random.normal(kx, (N, in_channels, H, W), dtype=jnp.float32)
    # Equalized conv stores raw N(0,1) weights.  The module inits bias to zero;
    # use small nonzero biases here so the bias path is actually exercised.
    w_sem = jax.random.normal(kws, (out_sem, in_channels), dtype=jnp.float32)
    w_ins = jax.random.normal(kwi, (out_ins, in_channels), dtype=jnp.float32)
    b_sem = 0.1 * jax.random.normal(kbs, (out_sem,), dtype=jnp.float32)
    b_ins = 0.1 * jax.random.normal(kbi, (out_ins,), dtype=jnp.float32)

    # --- f32 path (matches the PyTorch reference math) ---------------------
    out = mask_forward(x, w_sem, b_sem, w_ins, b_ins)
    out = jax.block_until_ready(out)

    scale = 1.0 / math.sqrt(in_channels)
    w_all = jnp.concatenate([w_sem, w_ins], axis=0) * scale
    b_all = jnp.concatenate([b_sem, b_ins], axis=0)
    ref = jnp.einsum("nchw,oc->nohw", x, w_all) + b_all[None, :, None, None]

    assert out.shape == (N, out_sem + out_ins, H, W)
    assert out.dtype == jnp.float32
    assert jnp.allclose(out, ref, atol=1e-3, rtol=1e-3)

    # --- bf16 path (native-dtype I/O, no wrapper upcast) --------------------
    out_bf16 = mask_forward(x.astype(jnp.bfloat16), w_sem, b_sem, w_ins, b_ins)
    out_bf16 = jax.block_until_ready(out_bf16)
    assert out_bf16.dtype == jnp.bfloat16
    # Intentional accuracy/bandwidth trade: loose tolerance vs the f32 ref.
    assert jnp.allclose(out_bf16.astype(jnp.float32), ref, atol=0.25, rtol=0.05)

    print("KERNEL_OK")
</pallas_src>

<mosaic_0001>
module attributes {stable_mosaic.version = 11 : i64} {
  func.func @kernel(%arg0: i32, %arg1: i32, %arg2: memref<2x32x256xf32, #tpu.memory_space<vmem>>, %arg3: memref<16x32xf32, #tpu.memory_space<vmem>>, %arg4: memref<16x1xf32, #tpu.memory_space<vmem>>, %arg5: memref<2x16x256xf32, #tpu.memory_space<vmem>>) attributes {dimension_semantics = [#tpu.dimension_semantics<parallel>, #tpu.dimension_semantics<parallel>], iteration_bounds = array<i64: 1, 1>, scalar_prefetch = 0 : i64, scratch_operands = 0 : i64, tpu.core_type = #tpu.core_type<tc>, window_params = [{transform_indices = @transform_0, window_bounds = array<i64: 2, 32, 256>}, {pipeline_mode = #tpu.pipeline_mode<synchronous>, transform_indices = @transform_1, window_bounds = array<i64: 16, 32>}, {pipeline_mode = #tpu.pipeline_mode<synchronous>, transform_indices = @transform_2, window_bounds = array<i64: 16, 1>}, {transform_indices = @transform_3, window_bounds = array<i64: 2, 16, 256>}]} {
    %c0 = arith.constant 0 : index
    %c0_0 = arith.constant 0 : index
    %0 = vector.load %arg3[%c0, %c0_0] : memref<16x32xf32, #tpu.memory_space<vmem>>, vector<16x32xf32>
    %c0_1 = arith.constant 0 : index
    %c0_2 = arith.constant 0 : index
    %1 = vector.load %arg4[%c0_1, %c0_2] : memref<16x1xf32, #tpu.memory_space<vmem>>, vector<16x1xf32>
    %c0_3 = arith.constant 0 : index
    %c0_4 = arith.constant 0 : index
    %c0_5 = arith.constant 0 : index
    %2 = vector.load %arg2[%c0_3, %c0_4, %c0_5] : memref<2x32x256xf32, #tpu.memory_space<vmem>>, vector<1x32x256xf32>
    %3 = vector.shape_cast %2 : vector<1x32x256xf32> to vector<32x256xf32>
    %cst = arith.constant dense<0.000000e+00> : vector<16x256xf32>
    %4 = tpu.matmul %0, %3, %cst {dimension_numbers = #tpu.dot_dimension_numbers<[1], [0], [0], [1], [0, 0, 1, 1], [], []>} : vector<16x32xf32>, vector<32x256xf32>, vector<16x256xf32> -> vector<16x256xf32>
    %5 = vector.broadcast %1 : vector<16x1xf32> to vector<16x256xf32>
    %6 = arith.addf %4, %5 : vector<16x256xf32>
    %c0_6 = arith.constant 0 : index
    %c0_7 = arith.constant 0 : index
    %c0_8 = arith.constant 0 : index
    %7 = vector.load %arg5[%c0_6, %c0_7, %c0_8] : memref<2x16x256xf32, #tpu.memory_space<vmem>>, vector<1x16x256xf32>
    %8 = vector.shape_cast %7 : vector<1x16x256xf32> to vector<16x256xf32>
    %9 = vector.shape_cast %6 : vector<16x256xf32> to vector<1x16x256xf32>
    tpu.vector_store %arg5[%c0_6, %c0_7, %c0_8], %9 {strides = array<i32>} : memref<2x16x256xf32, #tpu.memory_space<vmem>>, vector<1x16x256xf32>,
    %c1 = arith.constant 1 : index
    %c0_9 = arith.constant 0 : index
    %c0_10 = arith.constant 0 : index
    %10 = vector.load %arg2[%c1, %c0_9, %c0_10] : memref<2x32x256xf32, #tpu.memory_space<vmem>>, vector<1x32x256xf32>
    %11 = vector.shape_cast %10 : vector<1x32x256xf32> to vector<32x256xf32>
    %cst_11 = arith.constant dense<0.000000e+00> : vector<16x256xf32>
    %12 = tpu.matmul %0, %11, %cst_11 {dimension_numbers = #tpu.dot_dimension_numbers<[1], [0], [0], [1], [0, 0, 1, 1], [], []>} : vector<16x32xf32>, vector<32x256xf32>, vector<16x256xf32> -> vector<16x256xf32>
    %13 = vector.broadcast %1 : vector<16x1xf32> to vector<16x256xf32>
    %14 = arith.addf %12, %13 : vector<16x256xf32>
    %c1_12 = arith.constant 1 : index
    %c0_13 = arith.constant 0 : index
    %c0_14 = arith.constant 0 : index
    %15 = vector.load %arg5[%c1_12, %c0_13, %c0_14] : memref<2x16x256xf32, #tpu.memory_space<vmem>>, vector<1x16x256xf32>
    %16 = vector.shape_cast %15 : vector<1x16x256xf32> to vector<16x256xf32>
    %17 = vector.shape_cast %14 : vector<16x256xf32> to vector<1x16x256xf32>
    tpu.vector_store %arg5[%c1_12, %c0_13, %c0_14], %17 {strides = array<i32>} : memref<2x16x256xf32, #tpu.memory_space<vmem>>, vector<1x16x256xf32>,
    return
  }
  func.func @transform_0(%arg0: i32, %arg1: i32) -> (i32, i32, i32) {
    %c0_i32 = arith.constant 0 : i32
    %c0_i32_0 = arith.constant 0 : i32
    return %arg0, %c0_i32, %arg1 : i32, i32, i32
  }
  func.func @transform_1(%arg0: i32, %arg1: i32) -> (i32, i32) {
    %c0_i32 = arith.constant 0 : i32
    %c0_i32_0 = arith.constant 0 : i32
    %c0_i32_1 = arith.constant 0 : i32
    return %c0_i32, %c0_i32_0 : i32, i32
  }
  func.func @transform_2(%arg0: i32, %arg1: i32) -> (i32, i32) {
    %c0_i32 = arith.constant 0 : i32
    %c0_i32_0 = arith.constant 0 : i32
    %c0_i32_1 = arith.constant 0 : i32
    return %c0_i32, %c0_i32_0 : i32, i32
  }
  func.func @transform_3(%arg0: i32, %arg1: i32) -> (i32, i32, i32) {
    %c0_i32 = arith.constant 0 : i32
    %c0_i32_0 = arith.constant 0 : i32
    return %arg0, %c0_i32, %arg1 : i32, i32, i32
  }
}

</mosaic_0001>

<bundles_post_ra>
// kernel: tpu_custom_call.1
= control target key start
LH: loop header
LB: loop body
LE: loop exit
PB: predicated region body
PF: predicated region fallthrough
CT: control target
= control target key end

     0   :  { %8 = vsyncpa [#allocation3], 0  ;;  %s390_s0 = inlined_call_operand.hbm [shape: f32[2,32,256], index: 0, kind: input, shape index: {}]   ;;  %s391_s1 = inlined_call_operand.vmem [shape: f32[16,32], index: 1, kind: input, shape index: {}]   ;;  %s392_s2 = inlined_call_operand.vmem [shape: f32[16,1], index: 2, kind: input, shape index: {}]   ;;  %s393_s3 = inlined_call_operand.hbm [shape: f32[2,16,256], index: 3, kind: output, shape index: {}]  }
   0x1   :  { %9 = vsyncpa [#allocation4], 0  ;;  %s322_s12 = smov [#allocation2]   ;;  %s274_s16 = scalar_lea.hbm %s390_s0, 2048 }
   0x2   :  { %s15_s13 = sshll.u32 %s322_s12, 4  ;;  %p275_p0 = scmp.ne.s32.totalorder %s390_s0, %s274_s16  ;;  %s16_s13 = int_to_ptr.vmem [resolvable:$true] %s15_s13 }
   0x3   :  { %p278_p1 = scmp.lt.u32.totalorder %s274_s16, %s390_s0 }
   0x5   :  { %p280_p2 = pnand %p278_p1, %p275_p0 }
   0x7   :  { %283 = shalt.err (!%p280_p2)
}
   0x8   :  { %s284_s21 = scalar_lea.vmem %s16_s13, 2048  ;;  %p289_p4 = scmp.lt.s32.totalorder %s16_s13, %s16_s13 }
   0x9   :  { %p285_p3 = scmp.ne.s32.totalorder %s16_s13, %s284_s21  ;;  %p290_p5 = scmp.lt.s32.totalorder %s284_s21, %s284_s21 }
   0xb   :  { %p291_p6 = por %p290_p5, %p289_p4 }
   0xd   :  { %p292_p7 = pnand %p291_p6, %p285_p3 }
   0xf   :  { %295 = shalt.err (!%p292_p7)
}
  0x10   :  { %s323_s22 = smov 256   ;;  %s324_s23 = smov 16  }
  0x11   :  { %21 = dma.hbm_to_vmem [thread:$0]  %s390_s0, 2048, %s16_s13, [#allocation3], %s323_s22, %s323_s22, %s324_s23  }
  0x12   :  { %318 = dma.done.wait [#allocation3], 2048  }
  0x13   :  { %319 = vsyncadd [#allocation3], 4294965248  ;;  %v325_v0 = vmov 0.0   ;;  %v326_v1 = vmov 0   ;;  %v34_v2 = vld [vmem:[#allocation2 + $0x8] sm:$0xff]  ;;  %v36_v3 = vld [vmem:[#allocation2 + $0x18] sm:$0xff] }
  0x14   :  { %122 = vmatprep.mubr.f32.mxu0 %v325_v0  ;;  %212 = vmatprep.mubr.f32.mxu1 %v325_v0  ;;  %v141_v4 = vld [vmem:[#allocation2 + $0x48] sm:$0xff]  ;;  %v251_v5 = vpack.c.bf16 %v36_v3, %v34_v2  ;;  %v143_v6 = vld [vmem:[#allocation2 + $0x58] sm:$0xff]  ;;  %v33_v7 = vld [vmem:[#allocation2] sm:$0xff]  ;;  %vm51_vm0 = vcmask 261120  }
  0x15   :  { %273 = vset.pattern.permute.xlu0 %v326_v1  ;;  %v35_v8 = vld [vmem:[#allocation2 + $0x10] sm:$0xff]  ;;  %v259_v9 = vpack.c.bf16 %v143_v6, %v141_v4  ;;  %v140_v11 = vld [vmem:[#allocation2 + $0x40] sm:$0xff]  ;;  %v38_v13 = vld [vmem:[#allocation2 + $0x28] sm:$0xff] }
  0x16   :  { %v253_v10 = vpack.c.bf16 %v35_v8, %v33_v7  ;;  %v142_v12 = vld [vmem:[#allocation2 + $0x50] sm:$0xff]  ;;  %252 = vmatprep.subr.bf16.mxu0 %v251_v5  ;;  %v40_v15 = vld [vmem:[#allocation2 + $0x38] sm:$0xff]  ;;  %v145_v16 = vld [vmem:[#allocation2 + $0x68] sm:$0xff] }
  0x17   :  { %v261_v14 = vpack.c.bf16 %v142_v12, %v140_v11  ;;  %v147_v17 = vld [vmem:[#allocation2 + $0x78] sm:$0xff]  ;;  %260 = vmatprep.subr.bf16.mxu1 %v259_v9  ;;  %v255_v18 = vpack.c.bf16 %v40_v15, %v38_v13  ;;  %v37_v20 = vld [vmem:[#allocation2 + $0x20] sm:$0xff]  ;;  %v39_v21 = vld [vmem:[#allocation2 + $0x30] sm:$0xff] }
  0x18   :  { %254 = vmatpush1.bf16.msra.mxu0 %v253_v10  ;;  %v263_v19 = vpack.c.bf16 %v147_v17, %v145_v16  ;;  %v144_v22 = vld [vmem:[#allocation2 + $0x60] sm:$0xff]  ;;  %v257_v23 = vpack.c.bf16 %v39_v21, %v37_v20  ;;  %v146_v24 = vld [vmem:[#allocation2 + $0x70] sm:$0xff]  ;;  %v32_v28 = vld [vmem:[%s392_s2 + $0x8] sm:$0xff] }
  0x19   :  { %262 = vmatpush1.bf16.msra.mxu1 %v261_v14  ;;  %256 = vmatprep.subr.bf16.mxu0 %v255_v18  ;;  %v265_v25 = vpack.c.bf16 %v146_v24, %v144_v22  ;;  %v31_v26 = vld [vmem:[%s392_s2] sm:$0xff]  ;;  %v30_v29 = vld [vmem:[%s391_s1 + $0x8] sm:$0xff]  ;;  %s327_s2 = smov [#allocation5]  }
  0x1a   :  { %264 = vmatprep.subr.bf16.mxu1 %v263_v19  ;;  %43 = vperm.xlu0 %273, %v31_v26   ;;  %v29_v27 = vld [vmem:[%s391_s1] sm:$0xff]  ;;  %s235_s6 = sshll.u32 %s327_s2, 4  ;;  %s236_s6 = int_to_ptr.vmem [resolvable:$true] %s235_s6 }
  0x1b   :  { %s296_s1 = scalar_lea.vmem %s236_s6, 1024  ;;  %p301_p9 = scmp.lt.s32.totalorder %s236_s6, %s236_s6 }
  0x1c   :  { %258 = vmatpush1.bf16.msra.mxu0 %v257_v23  ;;  %p297_p8 = scmp.ne.s32.totalorder %s236_s6, %s296_s1  ;;  %p302_p10 = scmp.lt.s32.totalorder %s296_s1, %s296_s1 }
  0x1d   :  { %266 = vmatpush1.bf16.msra.mxu1 %v265_v25 }
  0x1e   :  { %48 = vperm.xlu0 %273, %v32_v28   ;;  %p303_p11 = por %p302_p10, %p301_p9 }
  0x1f   :  { %247 = vmatmul.mubr.msk.f32.vlgmr.msra.gmra.mrb[0].mxu0 %vm51_vm0, %v29_v27 }
  0x20   :  { %249 = vmatmul.mubr.msk.f32.vlgmr.msra.gmra.mrb[0].mxu1 %vm51_vm0, %v29_v27  ;;  %128 = vmatprep.mubr.f32.mxu0 %v325_v0  ;;  %p304_p12 = pnand %p303_p11, %p297_p8 }
  0x21   :  { %218 = vmatprep.mubr.f32.mxu1 %v325_v0 }
  0x23   :  { %248 = vmatmul.mubr.msk.f32.gmra.mrb[2].mxu0 %vm51_vm0, %v30_v29 }
  0x24   :  { %250 = vmatmul.mubr.msk.f32.gmra.mrb[2].mxu1 %vm51_vm0, %v30_v29 }
  0x99   :  { %v44_v30 = vpop.permute.xlu0 %43 }
  0x9d   :  { %v49_v39 = vpop.permute.xlu0 %48 }
  0xf2   :  { %v124_v31 = vpop.f32.mrb[0].mxu0 }
  0xf3   :  { %v125_v32 = vadd.f32 %v124_v31, %v44_v30  ;;  %v214_v33 = vpop.f32.mrb[0].mxu1  ;;  %v126_v34 = vpop.f32.mrb[1].mxu0 }
  0xf4   :  { %v215_v35 = vadd.f32 %v214_v33, %v44_v30  ;;  %v127_v36 = vadd.f32 %v126_v34, %v44_v30  ;;  %v216_v37 = vpop.f32.mrb[1].mxu1 }
  0xf5   :  { %135 = vst [vmem:[#allocation5] sm:$0xff] %v125_v32  ;;  %v217_v38 = vadd.f32 %v216_v37, %v44_v30 }
  0xf6   :  { %226 = vst [vmem:[#allocation5 + $0x20] sm:$0xff] %v215_v35  ;;  %136 = vst [vmem:[#allocation5 + $0x8] sm:$0xff] %v127_v36  ;;  %v130_v40 = vpop.f32.mrb[2].mxu0 }
  0xf7   :  { %227 = vst [vmem:[#allocation5 + $0x28] sm:$0xff] %v217_v38  ;;  %v131_v41 = vadd.f32 %v130_v40, %v49_v39  ;;  %v220_v42 = vpop.f32.mrb[2].mxu1  ;;  %v132_v43 = vpop.f32.mrb[3].mxu0 }
  0xf8   :  { %v221_v44 = vadd.f32 %v220_v42, %v49_v39  ;;  %v133_v45 = vadd.f32 %v132_v43, %v49_v39  ;;  %v222_v46 = vpop.f32.mrb[3].mxu1 }
  0xf9   :  { %137 = vst [vmem:[#allocation5 + $0x10] sm:$0xff] %v131_v41  ;;  %v223_v47 = vadd.f32 %v222_v46, %v49_v39 }
  0xfa   :  { %228 = vst [vmem:[#allocation5 + $0x30] sm:$0xff] %v221_v44  ;;  %138 = vst [vmem:[#allocation5 + $0x18] sm:$0xff] %v133_v45 }
  0xfb   :  { %229 = vst [vmem:[#allocation5 + $0x38] sm:$0xff] %v223_v47 }
  0xfc   :  { %307 = shalt.err (!%p304_p12)
}
  0xfd   :  { %s308_s9 = scalar_lea.hbm %s393_s3, 1024 }
  0xfe   :  { %p309_p13 = scmp.ne.s32.totalorder %s393_s3, %s308_s9  ;;  %p312_p0 = scmp.lt.u32.totalorder %s308_s9, %s393_s3 }
 0x100   :  { %p314_p1 = pnand %p312_p0, %p309_p13 }
 0x102   :  { %317 = shalt.err (!%p314_p1)
}
 0x103   :  { %241 = dma.vmem_to_hbm [thread:$0]  %s236_s6, 1024, %s393_s3, [#allocation4], %s323_s22, %s323_s22, %s324_s23  }
 0x104   :  { %320 = dma.done.wait [#allocation4], 1024  }
 0x105   :  { %321 = vsyncadd [#allocation4], 4294966272 }
 0x106   :  { %245 = vsyncpa [#allocation3], 1 }
 0x107   :  { %246 = vsyncpa [#allocation4], 1 }

</bundles_post_ra>
